<compile_context>
chip_gen: v5e
topology: v5e:2x2
jax: 0.10.0
libtpu: 0.0.40
codegen_flags: <defaults>
</compile_context>

<pallas_src>
import jax
import jax.numpy as jnp
from jax.experimental import pallas as pl
from jax.experimental.pallas import tpu as pltpu


def _bias_add_kernel(b_ref, x_ref, o_ref):
    # b_ref: (CB, 1) VMEM block; x_ref / o_ref: (1, CB, S) VMEM tiles.
    # (CB, 1) broadcasts against (1, CB, S) along the lane axis on the VPU.
    o_ref[...] = (x_ref[...] + b_ref[...]).astype(o_ref.dtype)


def _sublane_multiple(dtype) -> int:
    """Sublane packing multiple: 8 for 4-byte, 16 for 2-byte, 32 for 1-byte."""
    itemsize = jnp.dtype(dtype).itemsize
    return max(8, 32 // max(1, itemsize))


def _pick_budget():
    """Per-block byte budget and optional scoped-VMEM limit, by generation."""
    kind = ""
    try:
        kind = jax.devices()[0].device_kind.lower()
    except Exception:
        pass
    if "v7" in kind:
        # ~6 MiB blocks; double-buffered in+out ~24 MiB, so raise the scoped
        # VMEM limit (default 32 MiB) but stay well under 64 MiB physical.
        return 6 << 20, 44 << 20
    if "v6" in kind:
        # 4x block ~12 MiB <= 32 MiB scoped-VMEM default.
        return 3 << 20, None
    if "v5" in kind:
        # ~8 MiB live <= v5e's 16 MiB scoped-VMEM default.
        return 2 << 20, None
    return 2 << 20, None  # conservative default for unknown generations


def _select_tiles(c: int, hw: int, itemsize: int, target_bytes: int,
                  sublane: int):
    """Jointly pick (CB, S) so CB * S * itemsize <= target_bytes.

    hw is assumed to be a multiple of 128 (lane axis pre-padded).  S must be a
    multiple of 128 dividing hw; CB must divide c and be a multiple of
    `sublane` (or equal c).  Picks the largest fitting block, preferring a
    larger S (lane-dense stores) on ties.
    """
    max_s = min(hw, max(128, (target_bytes // itemsize) // 128 * 128))
    s_cands = [s for s in range(128, max_s + 1, 128) if hw % s == 0]
    if not s_cands:
        s_cands = [128] if hw % 128 == 0 else [hw]
    cb_cands = [cb for cb in range(1, c + 1)
                if c % cb == 0 and (cb % sublane == 0 or cb == c)]

    best = None
    for s in s_cands:
        for cb in cb_cands:
            nbytes = cb * s * itemsize
            if nbytes > target_bytes:
                continue
            key = (nbytes, s)
            if best is None or key > best[0]:
                best = (key, (cb, s))
    if best is not None:
        return best[1]
    # Nothing fits (tiny budget): minimum valid block, never an oversized one.
    return min(cb_cands), min(s_cands)


def bias_add(x: jax.Array, bias: jax.Array) -> jax.Array:
    """Computes bias[:, None, None] + x for x of shape (N, C, H, W) (NCHW)."""
    N, C, H, W = x.shape
    assert bias.shape == (C,)

    out_dtype = jnp.result_type(x.dtype, bias.dtype)
    itemsize = jnp.dtype(out_dtype).itemsize
    HW = H * W
    # Lane axis must be a multiple of 128 for unmasked full-width stores.
    HW_pad = -(-HW // 128) * 128

    # Lane-dense presentation of the same data (pure layout plumbing).
    x3 = x.reshape(N, C, HW)
    if HW_pad != HW:
        x3 = jnp.pad(x3, ((0, 0), (0, 0), (0, HW_pad - HW)))
    b2 = bias.reshape(C, 1)

    target_bytes, vmem_limit = _pick_budget()
    sublane = _sublane_multiple(out_dtype)
    CB, S = _select_tiles(C, HW_pad, itemsize, target_bytes, sublane)

    grid = (N, C // CB, HW_pad // S)

    cost = pl.CostEstimate(
        flops=N * C * HW_pad,
        transcendentals=0,
        bytes_accessed=(N * C * HW_pad * x.dtype.itemsize      # read x
                        + N * C * HW_pad * itemsize            # write out
                        + bias.size * bias.dtype.itemsize),    # read bias
    )

    out3 = pl.pallas_call(
        _bias_add_kernel,
        out_shape=jax.ShapeDtypeStruct((N, C, HW_pad), out_dtype),
        grid=grid,
        in_specs=[
            # Per-channel-block bias, resident in VMEM, broadcast along lanes.
            pl.BlockSpec((CB, 1), lambda n, cb, s: (cb, 0)),
            # Lane-dense (1, CB, S) slab of the flattened input.
            pl.BlockSpec((1, CB, S), lambda n, cb, s: (n, cb, s)),
        ],
        out_specs=pl.BlockSpec((1, CB, S), lambda n, cb, s: (n, cb, s)),
        compiler_params=pltpu.CompilerParams(
            dimension_semantics=("parallel", "parallel", "parallel"),
            vmem_limit_bytes=vmem_limit,
        ),
        cost_estimate=cost,
    )(b2, x3)

    if HW_pad != HW:
        out3 = out3[:, :, :HW]
    return out3.reshape(N, C, H, W)


if __name__ == "__main__":
    key = jax.random.PRNGKey(0)
    kx, kb = jax.random.split(key)

    N, C, H, W = 2, 4, 16, 16
    x = jax.random.normal(kx, (N, C, H, W), dtype=jnp.float32)
    # PyTorch initializes the bias parameter to zeros; use a non-trivial bias
    # here so the broadcast-add is actually exercised.
    bias = jax.random.normal(kb, (C,), dtype=jnp.float32)

    out = jax.block_until_ready(bias_add(x, bias))

    ref = bias[None, :, None, None] + x  # PyTorch: bias[:, None, None] + x (NCHW)
    assert out.shape == ref.shape and out.dtype == ref.dtype
    assert jnp.allclose(out, ref, atol=1e-6, rtol=1e-6)

    print("KERNEL_OK")
</pallas_src>

<mosaic_0001>
module attributes {stable_mosaic.version = 11 : i64} {
  func.func @_bias_add_kernel(%arg0: i32, %arg1: i32, %arg2: i32, %arg3: memref<4x1xf32, #tpu.memory_space<vmem>>, %arg4: memref<1x4x256xf32, #tpu.memory_space<vmem>>, %arg5: memref<1x4x256xf32, #tpu.memory_space<vmem>>) attributes {dimension_semantics = [#tpu.dimension_semantics<parallel>, #tpu.dimension_semantics<parallel>, #tpu.dimension_semantics<parallel>], iteration_bounds = array<i64: 2, 1, 1>, scalar_prefetch = 0 : i64, scratch_operands = 0 : i64, tpu.core_type = #tpu.core_type<tc>, window_params = [{transform_indices = @transform_0, window_bounds = array<i64: 4, 1>}, {transform_indices = @transform_1, window_bounds = array<i64: 1, 4, 256>}, {transform_indices = @transform_2, window_bounds = array<i64: 1, 4, 256>}]} {
    %c0 = arith.constant 0 : index
    %c0_0 = arith.constant 0 : index
    %c0_1 = arith.constant 0 : index
    %0 = vector.load %arg4[%c0, %c0_0, %c0_1] : memref<1x4x256xf32, #tpu.memory_space<vmem>>, vector<1x4x256xf32>
    %c0_2 = arith.constant 0 : index
    %c0_3 = arith.constant 0 : index
    %1 = vector.load %arg3[%c0_2, %c0_3] : memref<4x1xf32, #tpu.memory_space<vmem>>, vector<4x1xf32>
    %2 = vector.shape_cast %1 : vector<4x1xf32> to vector<1x4x1xf32>
    %3 = vector.broadcast %2 : vector<1x4x1xf32> to vector<1x4x256xf32>
    %4 = arith.addf %0, %3 : vector<1x4x256xf32>
    %c0_4 = arith.constant 0 : index
    %c0_5 = arith.constant 0 : index
    %c0_6 = arith.constant 0 : index
    %5 = vector.load %arg5[%c0_4, %c0_5, %c0_6] : memref<1x4x256xf32, #tpu.memory_space<vmem>>, vector<1x4x256xf32>
    tpu.vector_store %arg5[%c0_4, %c0_5, %c0_6], %4 {strides = array<i32>} : memref<1x4x256xf32, #tpu.memory_space<vmem>>, vector<1x4x256xf32>,
    return
  }
  func.func @transform_0(%arg0: i32, %arg1: i32, %arg2: i32) -> (i32, i32) {
    %c0_i32 = arith.constant 0 : i32
    %c0_i32_0 = arith.constant 0 : i32
    return %arg1, %c0_i32 : i32, i32
  }
  func.func @transform_1(%arg0: i32, %arg1: i32, %arg2: i32) -> (i32, i32, i32) {
    %c0_i32 = arith.constant 0 : i32
    return %arg0, %arg1, %arg2 : i32, i32, i32
  }
  func.func @transform_2(%arg0: i32, %arg1: i32, %arg2: i32) -> (i32, i32, i32) {
    %c0_i32 = arith.constant 0 : i32
    return %arg0, %arg1, %arg2 : i32, i32, i32
  }
}

</mosaic_0001>

<bundles_post_ra>
// kernel: tpu_custom_call.1
= control target key start
LH: loop header
LB: loop body
LE: loop exit
PB: predicated region body
PF: predicated region fallthrough
CT: control target
= control target key end

     0   :  { %7 = vsyncpa [#allocation3], 0  ;;  %s689_s0 = inlined_call_operand.vmem [shape: f32[4,1], index: 0, kind: input, shape index: {}]   ;;  %s690_s1 = inlined_call_operand.hbm [shape: f32[2,4,256], index: 1, kind: input, shape index: {}]   ;;  %s691_s2 = inlined_call_operand.hbm [shape: f32[2,4,256], index: 2, kind: output, shape index: {}]  }
   0x1   :  { %9 = vsyncpa [#allocation3 + $0x1], 0 }
   0x2   :  { %10 = vsyncpa [#allocation4], 0 }
   0x3   :  { %12 = vsyncpa [#allocation4 + $0x1], 0  ;;  %s566_s9 = smov 0   ;;  %s568_s10 = smov 0  }
   0x4   :  { %s570_s11 = smov 0   ;;  %s572_s12 = smov 0  }
   0x5   :  { %s574_s13 = smov 0   ;;  %s576_s14 = smov 0  }
   0x6 LB: > { %s352_s15 = sadd.s32 4294967295, %s547_s14   ;;  %s353_s16 = sadd.s32 4294967294, %s547_s14   ;;  %s547_s14 = sphi %s576_s14, %s18_s14   ;;  %s543_s13 = sphi %s574_s13, %s700_s13   ;;  %s539_s12 = sphi %s572_s12, %s699_s12   ;;  %s535_s11 = sphi %s570_s11, %s698_s11   ;;  %s531_s10 = sphi %s568_s10, %s697_s10   ;;  %s527_s9 = sphi %s566_s9, %s696_s9  }
   0x7   : > { %s37_s17 = sadd.s32 1, %s543_s13  ;;  %s74_s18 = sadd.s32 1, %s535_s11 }
   0x8   : > { %p39_p0 = scmp.ge.s32.totalorder %s37_s17, 2  ;;  %p81_p1 = scmp.ne.s32.totalorder %s535_s11, %s531_s10 }
   0x9   : > { %p82_p2 = scmp.eq.s32.totalorder %s547_s14, 0  ;;  %p87_p3 = scmp.ne.s32.totalorder %s531_s10, %s527_s9 }
   0xa   : > { %s702_s17 = smov (%p39_p0, %s37_s17), 0  ;;  %p88_p5 = scmp.eq.s32.totalorder %s352_s15, 0 }
   0xb   : > { %p607_p4 = por %p82_p2, %p81_p1  ;;  %s67_s20 = ssub.s32 %s543_s13, %s702_s17 }
   0xc   : > { %p115_p6 = scmp.eq.s32.totalorder %s352_s15, 1  ;;  %p72_p7 = scmp.eq.s32.totalorder %s67_s20, 0 }
   0xd   : > { %p613_p8 = por %p88_p5, %p87_p3  ;;  %p121_p10 = scmp.eq.s32.totalorder %s353_s16, 1 }
   0xe   : > { %p617_p9 = por %p115_p6, %p81_p1  ;;  %p356_p12 = scmp.ge.s32.totalorder %s547_s14, 2 }
   0xf   : > { %s622_s23 = scalar_select %p72_p7, %s535_s11, %s74_s18  }
  0x10   : > { %p624_p11 = por %p121_p10, %p87_p3  ;;  %p382_p13 = scmp.lt.s32.totalorder %s547_s14, 2 }
  0x11   : > { %s148_s25 = sand.u32 1, %s535_s11   ;;  %s368_s27 = sshll.u32 %s543_s13, 3 }
  0x12   : > { %s357_s26 = sshll.u32 %s148_s25, 3  ;;  %s161_s30 = scalar_lea.hbm %s690_s1, %s368_s27 }
  0x13   : > { %s152_s3 = scalar_lea.vmem [#allocation2], %s357_s26  ;;  %s163_s5 = sshll.u32 %s161_s30, 4  ;;  %s164_s5 = int_to_ptr.hbm [resolvable:$true] %s163_s5 }
  0x14   : > { %s165_s4 = sshll.u32 %s152_s3, 4  ;;  %p375_p0 = pnand %p382_p13, %p607_p4  ;;  %s166_s4 = int_to_ptr.vmem [resolvable:$true] %s165_s4 }
  0x15   : > { %p360_p1 = scmp.ge.s32.totalorder %s547_s14, 1  ;;  %p170_p2 = scmp.lt.s32.totalorder %s547_s14, 3 }
  0x16   : > { %s149_s6 = scalar_lea.sflag [#allocation3], %s148_s25 }
  0x17   : > { %377 = dma.hbm_to_vmem [thread:$0]  (!%p375_p0), %s164_s5, 128, %s166_s4, %s149_s6  }
  0x18   : > { %p171_p3 = pnand %p360_p1, %p170_p2 }
  0x19   : > { %s640_s7 = sand.u32 (!%p171_p3), 1, %s531_s10  }
  0x1a   : > { %174 = sbr.rel (%p171_p3) target bundleno = 156 (0x9c), region = 28  ;;  %s361_s8 = sshll.u32 (!%p171_p3), %s640_s7, 3 }
  0x1b   : > { %s177_s15 = scalar_lea.sflag (!%p171_p3), [#allocation3], %s640_s7  ;;  %s180_s16 = scalar_lea.vmem (!%p171_p3), [#allocation2], %s361_s8 }
  0x1f   : > { %518 = dma.done.wait (%p613_p8), %s177_s15, 128  }
  0x20   : > { %520 = vsyncadd (%p613_p8), %s177_s15, 4294967168  ;;  %v549_v0 = vmov 0   ;;  %v213_v1 = vld [vmem:[%s689_s0] sm:$0xf]  ;;  %v550_v2 = vmov 839922192  }
  0x21   : > { %434 = vset.pattern.permute.xlu0 %v549_v0  ;;  %v219_v3 = vunpack.c.l.s4 %v550_v2  ;;  %s369_s20 = sshll.u32 %s539_s12, 3  ;;  %v212_v6 = vld [vmem:[%s180_s16] sm:$0xff]  ;;  %s205_s21 = scalar_lea.vmem [#allocation5], %s361_s8 }
  0x22   : > { %216 = vperm.xlu0 %434, %v213_v1   ;;  %s241_s27 = scalar_lea.hbm %s691_s2, %s369_s20  ;;  %s243_s28 = sshll.u32 %s205_s21, 4  ;;  %s244_s28 = int_to_ptr.vmem [resolvable:$true] %s243_s28 }
  0x23   : > { %v220_v4 = vunpack.c.0.s8 %v219_v3  ;;  %s245_s29 = sshll.u32 %s241_s27, 4  ;;  %s226_s30 = scalar_lea.sflag [#allocation4], %s640_s7  ;;  %s246_s29 = int_to_ptr.hbm [resolvable:$true] %s245_s29 }
  0x24   : > { %s479_s3 = sshra.s32 %s246_s29, 4  ;;  %s485_s6 = scalar_lea.hbm %s691_s2, 16  ;;  %s480_s3 = int_to_ptr.hbm [resolvable:$true] %s479_s3 }
  0x25   : > { %s481_s12 = scalar_lea.hbm %s480_s3, 8  ;;  %p486_p7 = scmp.lt.s32.totalorder %s480_s3, %s691_s2 }
  0x26   : > { %p482_p4 = scmp.ne.s32.totalorder %s480_s3, %s481_s12  ;;  %p487_p8 = scmp.lt.s32.totalorder %s485_s6, %s481_s12 }
  0x28   : > { %p483_p5 = pnand %p482_p4, %p617_p9  ;;  %p488_p10 = por %p487_p8, %p486_p7 }
  0x2a   : > { %p484_p6 = pneg %p483_p5 }
  0x2c   : > { %p489_p13 = pnand %p488_p10, %p484_p6 }
  0x94   : > { %v217_v5 = vpop.permute.xlu0 %216 }
  0x95   : > { %v221_v7 = vperm.slane %v217_v5, %v220_v4 }
  0x97   : > { %v223_v8 = vadd.f32 %v221_v7, %v212_v6 }
  0x99   : > { %224 = vst [vmem:[%s205_s21] sm:$0xff] %v223_v8 }
  0x9a   : > { %492 = shalt.err (!%p489_p13)
}
  0x9b   : > { %372 = dma.vmem_to_hbm [thread:$0]  (%p617_p9), %s244_s28, 128, %s246_s29, %s226_s30  }
  0x9c PF: > { %s257_s7 = sand.u32 1, %s527_s9   ;;  %p379_p0 = pnand %p356_p12, %p624_p11 }
  0x9d   : > { %s258_s16 = scalar_lea.sflag [#allocation4], %s257_s7 }
  0x9e   : > { %p380_p1 = pneg %p379_p0 }
  0xa0   : > { %522 = dma.done.wait (%p380_p1), %s258_s16, 128  }
  0xa1   : > { %524 = vsyncadd (%p380_p1), %s258_s16, 4294967168  ;;  %s18_s14 = sadd.s32 1, %s547_s14   ;;  %s696_s9 = smov %s531_s10 }
  0xa2   : > { %p15_p2 = scmp.ge.s32.totalorder %s18_s14, 4   ;;  %s697_s10 = smov %s535_s11 }
  0xa3   : > { %s698_s11 = smov %s622_s23  ;;  %s699_s12 = smov %s543_s13 }
  0xa4   : > { %s700_s13 = smov %s702_s17  ;;  %17 = sbr.rel (!%p15_p2) target bundleno = 6 (0x6), region = 76 }
  0xa9   :  { %264 = vsyncpa [#allocation3], 1 }
  0xaa   :  { %266 = vsyncpa [#allocation3 + $0x1], 1 }
  0xab   :  { %267 = vsyncpa [#allocation4], 1 }
  0xac   :  { %269 = vsyncpa [#allocation4 + $0x1], 1 }

</bundles_post_ra>
